<compile_context>
chip_gen: v6e
topology: v6e:2x2x1
jax: 0.10.0
libtpu: 0.0.40
codegen_flags: <defaults>
</compile_context>

<pallas_src>
import jax
import jax.numpy as jnp
from jax.experimental import pallas as pl
from jax.experimental.pallas import tpu as pltpu

# ---------------- configuration ----------------
NODE_COUNTS = [8, 32, 32, 4]
SKIP_INDICES = [2, 5]
BATCH = 8
BN_EPS = 1e-5

N_FEATURES = NODE_COUNTS[0] + len(SKIP_INDICES)   # 10
N_HID = NODE_COUNTS[1]                            # 32
N_OUT = NODE_COUNTS[-1]                           # 4

# Row offsets inside the packed matrix slab (8-aligned -> cheap sublane slices)
W1_OFF, W2_OFF, W3_OFF = 0, 16, 48
W_ROWS = W3_OFF + NODE_COUNTS[2]                  # 80

# Row meaning inside the packed vector slab (8, 32)
V_B1, V_B2, V_B3, V_W2S0, V_W2S1 = 0, 1, 2, 3, 4
V_ROWS = 8

# Batch tiling: single tile up to this size, then split (>=2 steps for v7x).
SINGLE_TILE_MAX = 2048
TILE_CAP = 4096


# ---------------- Pallas kernel ----------------
def skip_connect_kernel(x_ref, w_ref, v_ref, sbn_ref, out_ref):
    x = x_ref[...]                                        # (TB, 10)

    # ---- left Linear(8->32) + BN1(left) + ReLU, all folded into W1'/b1'.
    # Non-skip column selection is baked in: W1' has zero rows at skip cols.
    w1 = w_ref[W1_OFF:W1_OFF + N_FEATURES, :]             # (10, 32)
    b1 = v_ref[V_B1:V_B1 + 1, :]                          # (1, 32)
    h_left = jnp.maximum(
        jnp.dot(x, w1, preferred_element_type=jnp.float32) + b1, 0.0)

    # ---- skip path: BN1(skip) + ReLU per skip column (scale/shift come from
    # SMEM scalars), then its K=2 contribution to the 34->32 Linear as two VPU
    # broadcast FMAs (avoids an MXU push for a K=2 contraction).
    i0, i1 = SKIP_INDICES
    s0, s1, sh0, sh1 = sbn_ref[0], sbn_ref[1], sbn_ref[2], sbn_ref[3]
    h_s0 = jnp.maximum(x[:, i0:i0 + 1] * s0 + sh0, 0.0)   # (TB, 1)
    h_s1 = jnp.maximum(x[:, i1:i1 + 1] * s1 + sh1, 0.0)   # (TB, 1)
    w2s0 = v_ref[V_W2S0:V_W2S0 + 1, :]                    # (1, 32) BN2-folded
    w2s1 = v_ref[V_W2S1:V_W2S1 + 1, :]                    # (1, 32) BN2-folded

    # ---- right block 1: Linear(34->32) with BN2 + ReLU folded in.
    w2l = w_ref[W2_OFF:W2_OFF + N_HID, :]                 # (32, 32)
    b2 = v_ref[V_B2:V_B2 + 1, :]                          # (1, 32)
    h = jnp.dot(h_left, w2l, preferred_element_type=jnp.float32)
    h = jnp.maximum(h + h_s0 * w2s0 + h_s1 * w2s1 + b2, 0.0)

    # ---- right block 2: Linear(32->4).  W3/b3 are column-padded to 32 with
    # zeros; store the full 32-wide result (lane-dense, unmasked vst) and let
    # the wrapper slice off the 4 live columns.
    w3 = w_ref[W3_OFF:W3_OFF + NODE_COUNTS[2], :]         # (32, 32)
    b3 = v_ref[V_B3:V_B3 + 1, :]                          # (1, 32)
    out_ref[...] = jnp.dot(h, w3, preferred_element_type=jnp.float32) + b3


# ---------------- parameter construction (deterministic) ----------------
def build_params(key):
    """Raw parameters, mirroring the PyTorch module (used by the reference)."""
    n0, n1, n2, n3 = NODE_COUNTS
    n_skip = len(SKIP_INDICES)
    n_cat = n1 + n_skip  # right_network input width

    ks = jax.random.split(key, 16)

    def lin(kw, kb, fan_in, fan_out):
        bound = 1.0 / jnp.sqrt(fan_in)
        w = jax.random.uniform(kw, (fan_in, fan_out), jnp.float32, -bound, bound)
        b = jax.random.uniform(kb, (1, fan_out), jnp.float32, -bound, bound)
        return w, b

    def bn(kg, kb, km, kv, feat):
        gamma = 1.0 + 0.1 * jax.random.normal(kg, (feat,), jnp.float32)
        beta = 0.1 * jax.random.normal(kb, (feat,), jnp.float32)
        mean = 0.1 * jax.random.normal(km, (feat,), jnp.float32)
        var = jax.random.uniform(kv, (feat,), jnp.float32, 0.5, 1.5)
        scale = gamma / jnp.sqrt(var + BN_EPS)
        shift = beta - mean * scale
        return scale.reshape(1, feat), shift.reshape(1, feat)

    w1, b1 = lin(ks[0], ks[1], n0, n1)
    bn1_s, bn1_b = bn(ks[2], ks[3], ks[4], ks[5], n_cat)
    w2, b2 = lin(ks[6], ks[7], n_cat, n2)
    bn2_s, bn2_b = bn(ks[8], ks[9], ks[10], ks[11], n2)
    w3, b3 = lin(ks[12], ks[13], n2, n3)

    return dict(w1=w1, b1=b1, bn1_s=bn1_s, bn1_b=bn1_b,
                w2=w2, b2=b2, bn2_s=bn2_s, bn2_b=bn2_b, w3=w3, b3=b3)


def pack_params(params):
    """One-time fold + pack of all parameters into two VMEM slabs + SMEM vec."""
    n0, n1, n2, n3 = NODE_COUNTS

    # Split BN1 scale/shift into the left (32) and skip (2) parts.
    bn1l_s, bn1s_s = params["bn1_s"][:, :n1], params["bn1_s"][:, n1:]
    bn1l_b, bn1s_b = params["bn1_b"][:, :n1], params["bn1_b"][:, n1:]

    # Fold BN1(left) into W1/b1 (exact: affine right after the matmul).
    w1f = params["w1"] * bn1l_s                       # (8, 32)
    b1f = params["b1"] * bn1l_s + bn1l_b              # (1, 32)

    # Fold BN2 into W2/b2 columns (exact: (A+B+C)*s = A*s + B*s + C*s).
    w2f = params["w2"] * params["bn2_s"]              # (34, 32)
    b2f = params["b2"] * params["bn2_s"] + params["bn2_b"]
    w2l, w2s = w2f[:n1, :], w2f[n1:, :]               # (32, 32), (2, 32)

    # Bake non-skip column selection into W1': zero rows at skip positions.
    non_skip = [i for i in range(N_FEATURES) if i not in SKIP_INDICES]
    w1_aug = jnp.zeros((N_FEATURES, n1), jnp.float32)
    w1_aug = w1_aug.at[jnp.array(non_skip, dtype=jnp.int32), :].set(w1f)

    # W3 padded to 32 output columns (zeros beyond the real 4).
    w3_pad = jnp.zeros((n2, n1), jnp.float32).at[:, :n3].set(params["w3"])

    # ---- matrix slab (80, 32) ----
    w_slab = jnp.zeros((W_ROWS, n1), jnp.float32)
    w_slab = w_slab.at[W1_OFF:W1_OFF + N_FEATURES, :].set(w1_aug)
    w_slab = w_slab.at[W2_OFF:W2_OFF + n1, :].set(w2l)
    w_slab = w_slab.at[W3_OFF:W3_OFF + n2, :].set(w3_pad)

    # ---- vector slab (8, 32) ----
    v_slab = jnp.zeros((V_ROWS, n1), jnp.float32)
    v_slab = v_slab.at[V_B1, :].set(b1f[0])
    v_slab = v_slab.at[V_B2, :].set(b2f[0])
    v_slab = v_slab.at[V_B3, :n3].set(params["b3"][0])
    v_slab = v_slab.at[V_W2S0, :].set(w2s[0])
    v_slab = v_slab.at[V_W2S1, :].set(w2s[1])

    # ---- skip-path BN scalars (SMEM): [scale0, scale1, shift0, shift1] ----
    skip_bn = jnp.array([bn1s_s[0, 0], bn1s_s[0, 1],
                         bn1s_b[0, 0], bn1s_b[0, 1]], jnp.float32)
    return w_slab, v_slab, skip_bn


# ---------------- wrapper ----------------
def _round_up(n, m):
    return ((n + m - 1) // m) * m


def _choose_tile_b(batch):
    b_pad = _round_up(batch, 8)
    if b_pad <= SINGLE_TILE_MAX:
        return b_pad                              # launch-bound regime: 1 step
    # Large batch: big tiles to amortize per-step overhead, but keep >= 2 grid
    # steps so both v7x TensorCores get work on the "parallel" axis.
    return min(TILE_CAP, _round_up(pl.cdiv(b_pad, 2), 8))


def skip_connect_forward(x, w_slab, v_slab, skip_bn):
    B, F = x.shape
    tile_b = _choose_tile_b(B)
    grid_n = pl.cdiv(B, tile_b)
    B_pad = grid_n * tile_b
    if B_pad != B:
        x = jnp.pad(x, ((0, B_pad - B), (0, 0)))  # ragged batch -> zero pad

    cost = pl.CostEstimate(
        flops=2 * B_pad * (N_FEATURES * N_HID + 2 * N_HID * N_HID),
        transcendentals=0,
        bytes_accessed=(B_pad * (N_FEATURES + N_HID)
                        + W_ROWS * N_HID + V_ROWS * N_HID + 4) * 4,
    )

    out_pad = pl.pallas_call(
        skip_connect_kernel,
        out_shape=jax.ShapeDtypeStruct((B_pad, N_HID), jnp.float32),  # lane-dense
        grid_spec=pltpu.PrefetchScalarGridSpec(
            num_scalar_prefetch=0,
            grid=(grid_n,),
            in_specs=[
                pl.BlockSpec((tile_b, F), lambda i: (i, 0)),       # batch-tiled activations
                pl.BlockSpec((W_ROWS, N_HID), lambda i: (0, 0)),   # weights stay VMEM-resident
                pl.BlockSpec((V_ROWS, N_HID), lambda i: (0, 0)),
                pl.BlockSpec(memory_space=pltpu.MemorySpace.SMEM), # 4 skip-path BN scalars
            ],
            out_specs=pl.BlockSpec((tile_b, N_HID), lambda i: (i, 0)),
        ),
        compiler_params=pltpu.CompilerParams(
            dimension_semantics=("parallel",)),
        cost_estimate=cost,
    )(x, w_slab, v_slab, skip_bn)

    # Slice off batch padding and the zero-padded output columns (Flatten on
    # (B, 4) is a no-op).  Pure layout plumbing outside the kernel.
    return out_pad[:B, :N_OUT]


# ---------------- pure-JAX reference (for correctness check) ----------------
def skip_connect_reference(x, params):
    F = x.shape[1]
    non_skip_indices = [i for i in range(F) if i not in SKIP_INDICES]
    skip_data = x[:, jnp.array(SKIP_INDICES)]
    nonskip_data = x[:, jnp.array(non_skip_indices)]

    left = nonskip_data @ params["w1"] + params["b1"]
    h = jnp.concatenate([left, skip_data], axis=1)
    h = jnp.maximum(h * params["bn1_s"] + params["bn1_b"], 0.0)
    h = h @ params["w2"] + params["b2"]
    h = jnp.maximum(h * params["bn2_s"] + params["bn2_b"], 0.0)
    return h @ params["w3"] + params["b3"]


if __name__ == "__main__":
    key = jax.random.PRNGKey(0)
    k_x, k_p = jax.random.split(key)

    x = jax.random.normal(k_x, (BATCH, N_FEATURES), jnp.float32)
    params = build_params(k_p)
    w_slab, v_slab, skip_bn = pack_params(params)   # one-time fold + pack

    out = skip_connect_forward(x, w_slab, v_slab, skip_bn)
    out = jax.block_until_ready(out)

    ref = skip_connect_reference(x, params)
    assert out.shape == (BATCH, N_OUT), out.shape
    assert jnp.allclose(out, ref, rtol=1e-3, atol=1e-3), "mismatch vs reference"

    print("KERNEL_OK")
</pallas_src>

<mosaic_0001>
module attributes {stable_mosaic.version = 11 : i64} {
  func.func @skip_connect_kernel(%arg0: i32, %arg1: memref<8x10xf32, #tpu.memory_space<vmem>>, %arg2: memref<80x32xf32, #tpu.memory_space<vmem>>, %arg3: memref<8x32xf32, #tpu.memory_space<vmem>>, %arg4: memref<4xf32, #tpu.memory_space<smem>>, %arg5: memref<8x32xf32, #tpu.memory_space<vmem>>) attributes {dimension_semantics = [#tpu.dimension_semantics<parallel>], iteration_bounds = array<i64: 1>, scalar_prefetch = 0 : i64, scratch_operands = 0 : i64, tpu.core_type = #tpu.core_type<tc>, window_params = [{transform_indices = @transform_0, window_bounds = array<i64: 8, 10>}, {pipeline_mode = #tpu.pipeline_mode<synchronous>, transform_indices = @transform_1, window_bounds = array<i64: 80, 32>}, {pipeline_mode = #tpu.pipeline_mode<synchronous>, transform_indices = @transform_2, window_bounds = array<i64: 8, 32>}, {transform_indices = @transform_3, window_bounds = array<i64: 4>}, {transform_indices = @transform_4, window_bounds = array<i64: 8, 32>}]} {
    %c0 = arith.constant 0 : index
    %c0_0 = arith.constant 0 : index
    %0 = vector.load %arg1[%c0, %c0_0] : memref<8x10xf32, #tpu.memory_space<vmem>>, vector<8x10xf32>
    %c0_1 = arith.constant 0 : index
    %c0_2 = arith.constant 0 : index
    %1 = vector.load %arg2[%c0_1, %c0_2] : memref<80x32xf32, #tpu.memory_space<vmem>>, vector<10x32xf32>
    %c0_3 = arith.constant 0 : index
    %c0_4 = arith.constant 0 : index
    %2 = vector.load %arg3[%c0_3, %c0_4] : memref<8x32xf32, #tpu.memory_space<vmem>>, vector<1x32xf32>
    %cst = arith.constant dense<0.000000e+00> : vector<8x32xf32>
    %3 = tpu.matmul %0, %1, %cst {dimension_numbers = #tpu.dot_dimension_numbers<[1], [0], [0], [1], [0, 0, 1, 1], [], []>} : vector<8x10xf32>, vector<10x32xf32>, vector<8x32xf32> -> vector<8x32xf32>
    %4 = vector.broadcast %2 : vector<1x32xf32> to vector<8x32xf32>
    %5 = arith.addf %3, %4 : vector<8x32xf32>
    %cst_5 = arith.constant 0.000000e+00 : f32
    %6 = vector.broadcast %cst_5 : f32 to vector<8x32xf32>
    %7 = arith.maximumf %5, %6 : vector<8x32xf32>
    %c0_6 = arith.constant 0 : index
    %8 = memref.load %arg4[%c0_6] : memref<4xf32, #tpu.memory_space<smem>>
    %c1 = arith.constant 1 : index
    %9 = memref.load %arg4[%c1] : memref<4xf32, #tpu.memory_space<smem>>
    %c2 = arith.constant 2 : index
    %10 = memref.load %arg4[%c2] : memref<4xf32, #tpu.memory_space<smem>>
    %c3 = arith.constant 3 : index
    %11 = memref.load %arg4[%c3] : memref<4xf32, #tpu.memory_space<smem>>
    %12 = vector.extract_strided_slice %0 {offsets = [0, 2], sizes = [8, 1], strides = [1, 1]} : vector<8x10xf32> to vector<8x1xf32>
    %13 = vector.broadcast %8 : f32 to vector<8x1xf32>
    %14 = arith.mulf %12, %13 : vector<8x1xf32>
    %15 = vector.broadcast %10 : f32 to vector<8x1xf32>
    %16 = arith.addf %14, %15 : vector<8x1xf32>
    %cst_7 = arith.constant 0.000000e+00 : f32
    %17 = vector.broadcast %cst_7 : f32 to vector<8x1xf32>
    %18 = arith.maximumf %16, %17 : vector<8x1xf32>
    %19 = vector.extract_strided_slice %0 {offsets = [0, 5], sizes = [8, 1], strides = [1, 1]} : vector<8x10xf32> to vector<8x1xf32>
    %20 = vector.broadcast %9 : f32 to vector<8x1xf32>
    %21 = arith.mulf %19, %20 : vector<8x1xf32>
    %22 = vector.broadcast %11 : f32 to vector<8x1xf32>
    %23 = arith.addf %21, %22 : vector<8x1xf32>
    %cst_8 = arith.constant 0.000000e+00 : f32
    %24 = vector.broadcast %cst_8 : f32 to vector<8x1xf32>
    %25 = arith.maximumf %23, %24 : vector<8x1xf32>
    %c3_9 = arith.constant 3 : index
    %c0_10 = arith.constant 0 : index
    %26 = vector.load %arg3[%c3_9, %c0_10] : memref<8x32xf32, #tpu.memory_space<vmem>>, vector<1x32xf32>
    %c4 = arith.constant 4 : index
    %c0_11 = arith.constant 0 : index
    %27 = vector.load %arg3[%c4, %c0_11] : memref<8x32xf32, #tpu.memory_space<vmem>>, vector<1x32xf32>
    %c16 = arith.constant 16 : index
    %c0_12 = arith.constant 0 : index
    %28 = vector.load %arg2[%c16, %c0_12] : memref<80x32xf32, #tpu.memory_space<vmem>>, vector<32x32xf32>
    %c1_13 = arith.constant 1 : index
    %c0_14 = arith.constant 0 : index
    %29 = vector.load %arg3[%c1_13, %c0_14] : memref<8x32xf32, #tpu.memory_space<vmem>>, vector<1x32xf32>
    %cst_15 = arith.constant dense<0.000000e+00> : vector<8x32xf32>
    %30 = tpu.matmul %7, %28, %cst_15 {dimension_numbers = #tpu.dot_dimension_numbers<[1], [0], [0], [1], [0, 0, 1, 1], [], []>} : vector<8x32xf32>, vector<32x32xf32>, vector<8x32xf32> -> vector<8x32xf32>
    %31 = vector.broadcast %18 : vector<8x1xf32> to vector<8x32xf32>
    %32 = vector.broadcast %26 : vector<1x32xf32> to vector<8x32xf32>
    %33 = arith.mulf %31, %32 : vector<8x32xf32>
    %34 = arith.addf %30, %33 : vector<8x32xf32>
    %35 = vector.broadcast %25 : vector<8x1xf32> to vector<8x32xf32>
    %36 = vector.broadcast %27 : vector<1x32xf32> to vector<8x32xf32>
    %37 = arith.mulf %35, %36 : vector<8x32xf32>
    %38 = arith.addf %34, %37 : vector<8x32xf32>
    %39 = vector.broadcast %29 : vector<1x32xf32> to vector<8x32xf32>
    %40 = arith.addf %38, %39 : vector<8x32xf32>
    %cst_16 = arith.constant 0.000000e+00 : f32
    %41 = vector.broadcast %cst_16 : f32 to vector<8x32xf32>
    %42 = arith.maximumf %40, %41 : vector<8x32xf32>
    %c48 = arith.constant 48 : index
    %c0_17 = arith.constant 0 : index
    %43 = vector.load %arg2[%c48, %c0_17] : memref<80x32xf32, #tpu.memory_space<vmem>>, vector<32x32xf32>
    %c2_18 = arith.constant 2 : index
    %c0_19 = arith.constant 0 : index
    %44 = vector.load %arg3[%c2_18, %c0_19] : memref<8x32xf32, #tpu.memory_space<vmem>>, vector<1x32xf32>
    %cst_20 = arith.constant dense<0.000000e+00> : vector<8x32xf32>
    %45 = tpu.matmul %42, %43, %cst_20 {dimension_numbers = #tpu.dot_dimension_numbers<[1], [0], [0], [1], [0, 0, 1, 1], [], []>} : vector<8x32xf32>, vector<32x32xf32>, vector<8x32xf32> -> vector<8x32xf32>
    %46 = vector.broadcast %44 : vector<1x32xf32> to vector<8x32xf32>
    %47 = arith.addf %45, %46 : vector<8x32xf32>
    %c0_21 = arith.constant 0 : index
    %c0_22 = arith.constant 0 : index
    %48 = vector.load %arg5[%c0_21, %c0_22] : memref<8x32xf32, #tpu.memory_space<vmem>>, vector<8x32xf32>
    tpu.vector_store %arg5[%c0_21, %c0_22], %47 {strides = array<i32>} : memref<8x32xf32, #tpu.memory_space<vmem>>, vector<8x32xf32>,
    return
  }
  func.func @transform_0(%arg0: i32) -> (i32, i32) {
    %c0_i32 = arith.constant 0 : i32
    %c0_i32_0 = arith.constant 0 : i32
    return %arg0, %c0_i32 : i32, i32
  }
  func.func @transform_1(%arg0: i32) -> (i32, i32) {
    %c0_i32 = arith.constant 0 : i32
    %c0_i32_0 = arith.constant 0 : i32
    %c0_i32_1 = arith.constant 0 : i32
    return %c0_i32, %c0_i32_0 : i32, i32
  }
  func.func @transform_2(%arg0: i32) -> (i32, i32) {
    %c0_i32 = arith.constant 0 : i32
    %c0_i32_0 = arith.constant 0 : i32
    %c0_i32_1 = arith.constant 0 : i32
    return %c0_i32, %c0_i32_0 : i32, i32
  }
  func.func @transform_3(%arg0: i32) -> i32 {
    %c0_i32 = arith.constant 0 : i32
    %c0_i32_0 = arith.constant 0 : i32
    return %c0_i32 : i32
  }
  func.func @transform_4(%arg0: i32) -> (i32, i32) {
    %c0_i32 = arith.constant 0 : i32
    %c0_i32_0 = arith.constant 0 : i32
    return %arg0, %c0_i32 : i32, i32
  }
}

</mosaic_0001>

<bundles_post_ra>
// kernel: tpu_custom_call.1
= control target key start
LH: loop header
LB: loop body
LE: loop exit
PB: predicated region body
PF: predicated region fallthrough
CT: control target
= control target key end

     0   :  { %9 = vsyncpa [#allocation4], 0  ;;  %s524_s0 = inlined_call_operand.vmem [shape: f32[8,10], index: 0, kind: input, shape index: {}]   ;;  %s525_s1 = inlined_call_operand.vmem [shape: f32[80,32], index: 1, kind: input, shape index: {}]   ;;  %s526_s2 = inlined_call_operand.vmem [shape: f32[8,32], index: 2, kind: input, shape index: {}]   ;;  %s527_s3 = inlined_call_operand.vmem [shape: f32[4], index: 3, kind: input, shape index: {}]   ;;  %s528_s4 = inlined_call_operand.hbm [shape: f32[8,32], index: 4, kind: output, shape index: {}]  }
   0x1   :  { %10 = vsyncpa [#allocation3], 0  ;;  %s23_s17 = sshll.u32 %s527_s3, 4  ;;  %s24_s17 = int_to_ptr.vmem [resolvable:$true] %s23_s17 }
   0x2   :  { %s400_s18 = scalar_lea.vmem %s24_s17, 16  ;;  %p405_p1 = scmp.lt.s32.totalorder %s24_s17, %s24_s17 }
   0x3   :  { %p401_p0 = scmp.ne.s32.totalorder %s24_s17, %s400_s18  ;;  %p406_p2 = scmp.lt.s32.totalorder %s400_s18, %s400_s18 }
   0x5   :  { %p407_p3 = por %p406_p2, %p405_p1 }
   0x7   :  { %p408_p4 = pnand %p407_p3, %p401_p0 }
   0x9   :  { %411 = shalt.err (!%p408_p4)
}
   0xa   :  { %s436_s19 = smov [#allocation2]  }
   0xb   :  { %26 = dma.vmem_to_smem %s24_s17, 16, %s436_s19, [#allocation4]  }
   0xc   :  { %432 = dma.done.wait [#allocation4], 16  }
   0xd   :  { %433 = vsyncadd [#allocation4], 4294967280 }
   0xe   :  { %30 = sfence }
   0xf   :  { %v33_v0 = vld [vmem:[%s525_s1 + $0x8] sm:$0x3]  ;;  %vm43_vm0 = vcmask 1041408   ;;  %v437_v1 = vmov 0.0   ;;  %v32_v2 = vld [vmem:[%s525_s1] sm:$0xff]  ;;  %vm438_vm1 = vmmov 0  }
  0x10   :  { %363 = vmatprep.subr.mxu0 %v437_v1  ;;  %367 = vmatprep.mubr.msk.f32.mxu0 %vm438_vm1, %v437_v1  ;;  %v137_v3 = vld [vmem:[%s525_s1 + $0x28] sm:$0xff]  ;;  %v31_v4 = vld [vmem:[%s524_s0] sm:$0xff]  ;;  %vm39_vm2 = vcmask 80896   ;;  %s341_s29 = sld [smem:[#allocation2 + $0x1]]  ;;  %v135_v6 = vld [vmem:[%s525_s1 + $0x18] sm:$0xff]  ;;  %v439_v8 = vmov 2  }
  0x11   :  { %364 = vmatpush3.msk.msra.mxu0 %vm43_vm0, %v33_v0  ;;  %370 = vmatprep.subr.mxu1 %v437_v1  ;;  %v136_v5 = vld [vmem:[%s525_s1 + $0x20] sm:$0xff]  ;;  %v134_v7 = vld [vmem:[%s525_s1 + $0x10] sm:$0xff]  ;;  %s118_s7 = sld [smem:[#allocation2]]  ;;  %v440_v19 = vmov 5   ;;  %vm149_vm3 = vcmask 261120   ;;  %v243_v25 = vld [vmem:[%s525_s1 + $0x48] sm:$0xff] }
  0x12   :  { %365 = vmatprep.subr.mxu0 %v437_v1  ;;  %371 = vmatpush3.msra.mxu1 %v137_v3  ;;  %s342_s8 = sld [smem:[#allocation2 + $0x2]]  ;;  %v338_v20 = vld [vmem:[%s526_s2] ss:$0 sm:$0xff]  ;;  %v241_v27 = vld [vmem:[%s525_s1 + $0x38] sm:$0xff]  ;;  %v240_v28 = vld [vmem:[%s525_s1 + $0x30] sm:$0xff]  ;;  %s441_s26 = smov [#allocation5]  }
  0x13   :  { %366 = vmatpush3.msra.mxu0 %v32_v2  ;;  %372 = vmatprep.subr.mxu1 %v437_v1  ;;  %s343_s9 = sld [smem:[#allocation2 + $0x3]]  ;;  %v242_v26 = vld [vmem:[%s525_s1 + $0x40] sm:$0xff]  ;;  %s329_s27 = sshll.u32 %s441_s26, 4  ;;  %s330_s27 = int_to_ptr.vmem [resolvable:$true] %s329_s27 }
  0x14   :  { %368 = vmatmul.mubr.msk.f32.vlgmr.msra.gmra.mxu0 %vm39_vm2, %v31_v4  ;;  %378 = vmatprep.mubr.msk.f32.mxu1 %vm438_vm1, %v437_v1  ;;  %v344_v30 = vld [vmem:[%s526_s2 + $0x3] ss:$0 sm:$0xff]  ;;  %v346_v31 = vld [vmem:[%s526_s2 + $0x4] ss:$0 sm:$0xff]  ;;  %v347_v37 = vld [vmem:[%s526_s2 + $0x1] ss:$0 sm:$0xff]  ;;  %p417_p6 = scmp.lt.s32.totalorder %s330_s27, %s330_s27 }
  0x15   :  { %381 = vmatprep.subr.mxu0 %v437_v1  ;;  %389 = vmatprep.mubr.msk.f32.mxu0 %vm438_vm1, %v437_v1  ;;  %v348_v42 = vld [vmem:[%s526_s2 + $0x2] ss:$0 sm:$0xff]  ;;  %s412_s28 = scalar_lea.vmem %s330_s27, 128 }
  0x16   :  { %373 = vmatpush3.msra.mxu1 %v136_v5  ;;  %398 = vset.pattern.permute.xlu0 %v439_v8  ;;  %v127_v9 = vstv %s341_s29  ;;  %p413_p5 = scmp.ne.s32.totalorder %s330_s27, %s412_s28  ;;  %p418_p7 = scmp.lt.s32.totalorder %s412_s28, %s412_s28 }
  0x17   :  { %374 = vmatprep.subr.mxu1 %v437_v1  ;;  %v128_v10 = vmul.f32 %v127_v9, %v31_v4  ;;  %v122_v11 = vstv %s118_s7  ;;  %382 = vmatpush3.msra.mxu0 %v243_v25 }
  0x18   :  { %375 = vmatpush3.msra.mxu1 %v135_v6  ;;  %v123_v12 = vmul.f32 %v122_v11, %v31_v4  ;;  %v124_v13 = vstv %s342_s8  ;;  %383 = vmatprep.subr.mxu0 %v437_v1  ;;  %p419_p8 = por %p418_p7, %p417_p6 }
  0x19   :  { %376 = vmatprep.subr.mxu1 %v437_v1  ;;  %v129_v14 = vstv %s343_s9  ;;  %384 = vmatpush3.msra.mxu0 %v242_v26 }
  0x1a   :  { %377 = vmatpush3.msra.mxu1 %v134_v7  ;;  %v125_v15 = vadd.f32 %v124_v13, %v123_v12  ;;  %v130_v16 = vadd.f32 %v129_v14, %v128_v10  ;;  %385 = vmatprep.subr.mxu0 %v437_v1  ;;  %p420_p9 = pnand %p419_p8, %p413_p5 }
  0x1b   :  { %386 = vmatpush3.msra.mxu0 %v241_v27 }
  0x1c   :  { %v126_v17 = vmax.f32 %v125_v15, 0.0  ;;  %v131_v18 = vmax.f32 %v130_v16, 0.0  ;;  %387 = vmatprep.subr.mxu0 %v437_v1 }
  0x1d   :  { %388 = vmatpush3.msra.mxu0 %v240_v28 }
  0x1e   :  { %141 = vperm.xlu0 %398, %v126_v17  }
  0x22   :  { %399 = vset.pattern.permute.xlu0 %v440_v19 }
  0x23   :  { %225 = vperm.xlu0 %399, %v131_v18  }
  0x99   :  { %v142_v29 = vpop.permute.xlu0 %141 }
  0x9a   :  { %v148_v33 = vmul.f32 %v344_v30, %v142_v29 }
  0x9e   :  { %v226_v32 = vpop.permute.xlu0 %225 }
  0x9f   :  { %v232_v34 = vmul.f32 %v346_v31, %v226_v32 }
  0xd4   :  { %v113_v21 = vpop.f32.mrf.mxu0 }
  0xd5   :  { %v114_v22 = vadd.f32 %v338_v20, %v113_v21 }
  0xd6   :  { %v369_v23 = vpop.f32.mrf.mxu0 }
  0xd7   :  { %v117_v24 = vmax.f32 %v114_v22, 0.0 }
  0xd9   :  { %379 = vmatmul.mubr.msk.f32.vlgmr.msra.gmra.mxu1 %vm149_vm3, %v117_v24 }
 0x199   :  { %v219_v35 = vpop.f32.mrf.mxu1 }
 0x19a   :  { %v220_v36 = vadd.f32 %v219_v35, %v148_v33 }
 0x19b   :  { %v380_v38 = vpop.f32.mrf.mxu1 }
 0x19c   :  { %v233_v39 = vadd.f32 %v232_v34, %v220_v36 }
 0x19e   :  { %v238_v40 = vadd.f32 %v347_v37, %v233_v39 }
 0x1a0   :  { %v239_v41 = vmax.f32 %v238_v40, 0.0 }
 0x1a2   :  { %390 = vmatmul.mubr.msk.f32.vlgmr.msra.gmra.mxu0 %vm149_vm3, %v239_v41 }
 0x262   :  { %v318_v43 = vpop.f32.mrf.mxu0 }
 0x263   :  { %v319_v44 = vadd.f32 %v348_v42, %v318_v43 }
 0x264   :  { %v391_v45 = vpop.f32.mrf.mxu0 }
 0x265   :  { %322 = vst.msk [vmem:[#allocation5] sm:$0xff] %vm149_vm3, %v319_v44 }
 0x266   :  { %423 = shalt.err (!%p420_p9)
}
 0x267   :  { %332 = dma.vmem_to_hbm [thread:$0]  %s330_s27, 128, %s528_s4, [#allocation3]  }
 0x268   :  { %434 = dma.done.wait [#allocation3], 128  }
 0x269   :  { %435 = vsyncadd [#allocation3], 4294967168 }
 0x26a   :  { %336 = vsyncpa [#allocation3], 1 }
 0x26b   :  { %337 = vsyncpa [#allocation4], 1 }

</bundles_post_ra>
